<compile_context>
chip_gen: v7x
topology: tpu7x:2x2x1
jax: 0.10.0
libtpu: 0.0.40
codegen_flags: <defaults>
</compile_context>

<pallas_src>
import jax
import jax.numpy as jnp
from jax import lax
from jax.experimental import pallas as pl
from jax.experimental.pallas import tpu as pltpu


def siam_head_kernel(c_ref, w_ref, b_ref, sim_ref, p1_ref, p2_ref):
    """SiamHead (CLS aggregation already applied at the wrapper).

    c_ref          : (2*TB, D)  interleaved CLS slabs [sent1 tile; sent2 tile] (bf16)
    w_ref          : (D, D)     projection weight (bf16, VMEM-resident across steps)
    b_ref          : (1, D)     projection bias (f32)
    sim_ref        : (TB, 1)    cosine-similarity logit (f32)
    p1_ref, p2_ref : (TB, D)    projected sentence embeddings (f32)
    """
    tb = p1_ref.shape[0]

    # Fused projection: one (2*TB, D) @ (D, D) MXU call, bf16 in / f32 acc.
    p = jnp.dot(c_ref[...], w_ref[...],
                preferred_element_type=jnp.float32) + b_ref[...]   # (2*TB, D) f32

    p1 = p[:tb, :]      # sublane-aligned slice (tb % 8 == 0) -> view, no copy
    p2 = p[tb:, :]
    p1_ref[...] = p1
    p2_ref[...] = p2

    # Cosine-similarity logit between the two projected embeddings.
    dot = jnp.sum(p1 * p2, axis=-1, keepdims=True)                 # (TB, 1)
    n1 = jnp.sum(p1 * p1, axis=-1, keepdims=True)
    n2 = jnp.sum(p2 * p2, axis=-1, keepdims=True)
    sim_ref[...] = dot * lax.rsqrt(n1 * n2 + 1e-8)


def siam_head(emb1, emb2, w, b, *, tb=8):
    """emb1, emb2: (B, S, D) contextual embeddings; w: (D, D); b: (1, D)."""
    B, S, D = emb1.shape

    # CLS aggregation (aggregation_type='CLS'): token 0 only. Sliced at the
    # wrapper boundary so the kernel never touches the full (B, S, D) tensors.
    cls1 = emb1[:, 0, :]                                           # (B, D)
    cls2 = emb2[:, 0, :]
    cls2 = cls2.astype(jnp.float32)
    cls1 = cls1.astype(jnp.float32)

    # Pad batch to a sublane multiple for clean (8, 128) tiling.
    bp = pl.cdiv(B, tb) * tb
    if bp != B:
        pad = ((0, bp - B), (0, 0))
        cls1 = jnp.pad(cls1, pad)
        cls2 = jnp.pad(cls2, pad)
    nblk = bp // tb

    # Interleave per-tile: rows [cls1_tile_i ; cls2_tile_i] contiguous, so the
    # kernel gets a single (2*TB, D) input stream per grid step. Cast to bf16
    # at the boundary to halve the activation DMA (f32 accumulation in-kernel).
    cls = jnp.stack(
        [cls1.reshape(nblk, tb, D), cls2.reshape(nblk, tb, D)], axis=1
    ).reshape(2 * bp, D).astype(jnp.bfloat16)

    # bf16 weight halves the weight DMA; it stays VMEM-resident across steps.
    w_bf16 = w.astype(jnp.bfloat16)
    b_f32 = b.astype(jnp.float32)

    out_shapes = (
        jax.ShapeDtypeStruct((bp, 1), jnp.float32),   # similarity logit
        jax.ShapeDtypeStruct((bp, D), jnp.float32),   # projected embedding 1
        jax.ShapeDtypeStruct((bp, D), jnp.float32),   # projected embedding 2
    )

    sim, p1, p2 = pl.pallas_call(
        siam_head_kernel,
        out_shape=out_shapes,
        grid=(nblk,),
        in_specs=[
            pl.BlockSpec((2 * tb, D), lambda i: (i, 0)),   # interleaved CLS slabs
            pl.BlockSpec((D, D), lambda i: (0, 0)),        # weight resident
            pl.BlockSpec((1, D), lambda i: (0, 0)),        # bias resident
        ],
        out_specs=(
            pl.BlockSpec((tb, 1), lambda i: (i, 0)),
            pl.BlockSpec((tb, D), lambda i: (i, 0)),
            pl.BlockSpec((tb, D), lambda i: (i, 0)),
        ),
        compiler_params=pltpu.CompilerParams(
            dimension_semantics=("parallel",)),
    )(cls, w_bf16, b_f32)

    return sim[:B], p1[:B], p2[:B]


def siam_head_ref(emb1, emb2, w, b):
    """Pure-JAX (f32) reference for correctness."""
    cls1 = emb1[:, 0, :]
    cls2 = emb2[:, 0, :]
    p1 = cls1 @ w + b
    p2 = cls2 @ w + b
    dot = jnp.sum(p1 * p2, axis=-1, keepdims=True)
    n1 = jnp.sum(p1 * p1, axis=-1, keepdims=True)
    n2 = jnp.sum(p2 * p2, axis=-1, keepdims=True)
    return dot * lax.rsqrt(n1 * n2 + 1e-8), p1, p2


if __name__ == "__main__":
    # Small, shape-consistent stand-ins: base_embedding_size 768 scaled to 128,
    # batch=2, seq_len=8. last_layer_size == base_embedding_size (siam head).
    B, S, D = 2, 8, 128

    key = jax.random.PRNGKey(0)
    k1, k2, kw, kb = jax.random.split(key, 4)

    # Deterministic stand-ins for the RoBERTa encoder outputs of sentence 1 / 2.
    emb1 = jax.random.normal(k1, (B, S, D), dtype=jnp.float32)
    emb2 = jax.random.normal(k2, (B, S, D), dtype=jnp.float32)

    # Deterministic SiamHead parameters (dense D -> D).
    w = jax.random.normal(kw, (D, D), dtype=jnp.float32) * (1.0 / jnp.sqrt(D))
    b = jax.random.normal(kb, (1, D), dtype=jnp.float32) * 0.01

    sim, p1, p2 = siam_head(emb1, emb2, w, b)
    jax.block_until_ready((sim, p1, p2))

    sim_r, p1_r, p2_r = siam_head_ref(emb1, emb2, w, b)
    assert sim.shape == (B, 1) and p1.shape == (B, D) and p2.shape == (B, D)
    # bf16 matmul with f32 accumulation vs f32 reference -> loose-ish tolerance.
    assert jnp.allclose(p1, p1_r, rtol=2e-2, atol=2e-2)
    assert jnp.allclose(p2, p2_r, rtol=2e-2, atol=2e-2)
    assert jnp.allclose(sim, sim_r, rtol=2e-2, atol=2e-2)

    print("KERNEL_OK")
</pallas_src>

<mosaic_0001>
module attributes {stable_mosaic.version = 11 : i64} {
  func.func @siam_head_kernel(%arg0: i32, %arg1: memref<16x128xbf16, #tpu.memory_space<vmem>>, %arg2: memref<128x128xbf16, #tpu.memory_space<vmem>>, %arg3: memref<1x128xf32, #tpu.memory_space<vmem>>, %arg4: memref<8x1xf32, #tpu.memory_space<vmem>>, %arg5: memref<8x128xf32, #tpu.memory_space<vmem>>, %arg6: memref<8x128xf32, #tpu.memory_space<vmem>>) attributes {dimension_semantics = [#tpu.dimension_semantics<parallel>], iteration_bounds = array<i64: 1>, scalar_prefetch = 0 : i64, scratch_operands = 0 : i64, tpu.core_type = #tpu.core_type<tc>, window_params = [{transform_indices = @transform_0, window_bounds = array<i64: 16, 128>}, {pipeline_mode = #tpu.pipeline_mode<synchronous>, transform_indices = @transform_1, window_bounds = array<i64: 128, 128>}, {pipeline_mode = #tpu.pipeline_mode<synchronous>, transform_indices = @transform_2, window_bounds = array<i64: 1, 128>}, {transform_indices = @transform_3, window_bounds = array<i64: 8, 1>}, {transform_indices = @transform_4, window_bounds = array<i64: 8, 128>}, {transform_indices = @transform_5, window_bounds = array<i64: 8, 128>}]} {
    %c0 = arith.constant 0 : index
    %c0_0 = arith.constant 0 : index
    %0 = vector.load %arg1[%c0, %c0_0] : memref<16x128xbf16, #tpu.memory_space<vmem>>, vector<16x128xbf16>
    %c0_1 = arith.constant 0 : index
    %c0_2 = arith.constant 0 : index
    %1 = vector.load %arg2[%c0_1, %c0_2] : memref<128x128xbf16, #tpu.memory_space<vmem>>, vector<128x128xbf16>
    %cst = arith.constant dense<0.000000e+00> : vector<16x128xf32>
    %2 = tpu.matmul %0, %1, %cst {dimension_numbers = #tpu.dot_dimension_numbers<[1], [0], [0], [1], [0, 0, 1, 1], [], []>} : vector<16x128xbf16>, vector<128x128xbf16>, vector<16x128xf32> -> vector<16x128xf32>
    %c0_3 = arith.constant 0 : index
    %c0_4 = arith.constant 0 : index
    %3 = vector.load %arg3[%c0_3, %c0_4] : memref<1x128xf32, #tpu.memory_space<vmem>>, vector<1x128xf32>
    %4 = vector.broadcast %3 : vector<1x128xf32> to vector<16x128xf32>
    %5 = arith.addf %2, %4 : vector<16x128xf32>
    %6 = vector.extract_strided_slice %5 {offsets = [0, 0], sizes = [8, 128], strides = [1, 1]} : vector<16x128xf32> to vector<8x128xf32>
    %7 = vector.extract_strided_slice %5 {offsets = [8, 0], sizes = [8, 128], strides = [1, 1]} : vector<16x128xf32> to vector<8x128xf32>
    %c0_5 = arith.constant 0 : index
    %c0_6 = arith.constant 0 : index
    %8 = vector.load %arg5[%c0_5, %c0_6] : memref<8x128xf32, #tpu.memory_space<vmem>>, vector<8x128xf32>
    tpu.vector_store %arg5[%c0_5, %c0_6], %6 {strides = array<i32>} : memref<8x128xf32, #tpu.memory_space<vmem>>, vector<8x128xf32>,
    %c0_7 = arith.constant 0 : index
    %c0_8 = arith.constant 0 : index
    %9 = vector.load %arg6[%c0_7, %c0_8] : memref<8x128xf32, #tpu.memory_space<vmem>>, vector<8x128xf32>
    tpu.vector_store %arg6[%c0_7, %c0_8], %7 {strides = array<i32>} : memref<8x128xf32, #tpu.memory_space<vmem>>, vector<8x128xf32>,
    %10 = arith.mulf %6, %7 : vector<8x128xf32>
    %cst_9 = arith.constant dense<0.000000e+00> : vector<8xf32>
    %11 = vector.multi_reduction <add>, %10, %cst_9 [1] : vector<8x128xf32> to vector<8xf32>
    %12 = vector.shape_cast %11 : vector<8xf32> to vector<8x1xf32>
    %13 = arith.mulf %6, %6 : vector<8x128xf32>
    %cst_10 = arith.constant dense<0.000000e+00> : vector<8xf32>
    %14 = vector.multi_reduction <add>, %13, %cst_10 [1] : vector<8x128xf32> to vector<8xf32>
    %15 = vector.shape_cast %14 : vector<8xf32> to vector<8x1xf32>
    %16 = arith.mulf %7, %7 : vector<8x128xf32>
    %cst_11 = arith.constant dense<0.000000e+00> : vector<8xf32>
    %17 = vector.multi_reduction <add>, %16, %cst_11 [1] : vector<8x128xf32> to vector<8xf32>
    %18 = vector.shape_cast %17 : vector<8xf32> to vector<8x1xf32>
    %19 = arith.mulf %15, %18 : vector<8x1xf32>
    %cst_12 = arith.constant 9.99999993E-9 : f32
    %20 = vector.broadcast %cst_12 : f32 to vector<8x1xf32>
    %21 = arith.addf %19, %20 : vector<8x1xf32>
    %22 = math.rsqrt %21 : vector<8x1xf32>
    %23 = arith.mulf %12, %22 : vector<8x1xf32>
    %c0_13 = arith.constant 0 : index
    %c0_14 = arith.constant 0 : index
    %24 = vector.load %arg4[%c0_13, %c0_14] : memref<8x1xf32, #tpu.memory_space<vmem>>, vector<8x1xf32>
    tpu.vector_store %arg4[%c0_13, %c0_14], %23 {strides = array<i32>} : memref<8x1xf32, #tpu.memory_space<vmem>>, vector<8x1xf32>,
    return
  }
  func.func @transform_0(%arg0: i32) -> (i32, i32) {
    %c0_i32 = arith.constant 0 : i32
    %c0_i32_0 = arith.constant 0 : i32
    return %arg0, %c0_i32 : i32, i32
  }
  func.func @transform_1(%arg0: i32) -> (i32, i32) {
    %c0_i32 = arith.constant 0 : i32
    %c0_i32_0 = arith.constant 0 : i32
    %c0_i32_1 = arith.constant 0 : i32
    return %c0_i32, %c0_i32_0 : i32, i32
  }
  func.func @transform_2(%arg0: i32) -> (i32, i32) {
    %c0_i32 = arith.constant 0 : i32
    %c0_i32_0 = arith.constant 0 : i32
    %c0_i32_1 = arith.constant 0 : i32
    return %c0_i32, %c0_i32_0 : i32, i32
  }
  func.func @transform_3(%arg0: i32) -> (i32, i32) {
    %c0_i32 = arith.constant 0 : i32
    %c0_i32_0 = arith.constant 0 : i32
    return %arg0, %c0_i32 : i32, i32
  }
  func.func @transform_4(%arg0: i32) -> (i32, i32) {
    %c0_i32 = arith.constant 0 : i32
    %c0_i32_0 = arith.constant 0 : i32
    return %arg0, %c0_i32 : i32, i32
  }
  func.func @transform_5(%arg0: i32) -> (i32, i32) {
    %c0_i32 = arith.constant 0 : i32
    %c0_i32_0 = arith.constant 0 : i32
    return %arg0, %c0_i32 : i32, i32
  }
}

</mosaic_0001>

<bundles_post_ra>
// kernel: tpu_custom_call.1
= control target key start
LH: loop header
LB: loop body
LE: loop exit
PB: predicated region body
PF: predicated region fallthrough
CT: control target
= control target key end

     0   :  { %11 = vsyncpa [#allocation3], 0  ;;  %s465_s0 = inlined_call_operand.hbm [shape: bf16[16,128], index: 0, kind: input, shape index: {}]   ;;  %s466_s1 = inlined_call_operand.hbm [shape: bf16[128,128], index: 1, kind: input, shape index: {}]   ;;  %s467_s2 = inlined_call_operand.vmem [shape: f32[1,128], index: 2, kind: input, shape index: {}]   ;;  %s468_s3 = inlined_call_operand.vmem [shape: f32[8,1], index: 3, kind: output, shape index: {0}]   ;;  %s469_s4 = inlined_call_operand.hbm [shape: f32[8,128], index: 4, kind: output, shape index: {1}]   ;;  %s470_s5 = inlined_call_operand.hbm [shape: f32[8,128], index: 5, kind: output, shape index: {2}]  }
   0x1   :  { %12 = vsyncpa [#allocation6], 0 }
   0x2   :  { %13 = vsyncpa [#allocation4], 0 }
   0x3   :  { %14 = vsyncpa [#allocation9], 0  ;;  %s373_s18 = smov [#allocation2]   ;;  %s277_s22 = scalar_lea.hbm %s465_s0, 128 }
   0x4   :  { %s20_s19 = sshll.u32 %s373_s18, 4  ;;  %p278_p0 = scmp.ne.s32.totalorder %s465_s0, %s277_s22  ;;  %s21_s19 = int_to_ptr.vmem [resolvable:$true] %s20_s19 }
   0x5   :  { %p281_p1 = scmp.lt.u32.totalorder %s277_s22, %s465_s0 }
   0x7   :  { %p283_p2 = pnand %p281_p1, %p278_p0 }
   0x9   :  { %286 = shalt.err (!%p283_p2)
}
   0xa   :  { %s287_s27 = scalar_lea.vmem %s21_s19, 128  ;;  %p292_p4 = scmp.lt.s32.totalorder %s21_s19, %s21_s19 }
   0xb   :  { %p288_p3 = scmp.ne.s32.totalorder %s21_s19, %s287_s27  ;;  %p293_p5 = scmp.lt.s32.totalorder %s287_s27, %s287_s27 }
   0xd   :  { %p294_p6 = por %p293_p5, %p292_p4 }
   0xf   :  { %p295_p7 = pnand %p294_p6, %p288_p3 }
  0x11   :  { %298 = shalt.err (!%p295_p7)
}
  0x12   :  { %s374_s28 = smov 64   ;;  %s375_s29 = smov 4  }
  0x13   :  { %26 = dma.hbm_to_vmem [thread:$0]  %s465_s0, 128, %s21_s19, [#allocation3], %s374_s28, %s374_s28, %s375_s29  }
  0x14   :  { %s376_s7 = smov [#allocation5]   ;;  %s299_s11 = scalar_lea.hbm %s466_s1, 1024 }
  0x15   :  { %s32_s8 = sshll.u32 %s376_s7, 4  ;;  %p300_p8 = scmp.ne.s32.totalorder %s466_s1, %s299_s11  ;;  %s33_s8 = int_to_ptr.vmem [resolvable:$true] %s32_s8 }
  0x16   :  { %p303_p9 = scmp.lt.u32.totalorder %s299_s11, %s466_s1 }
  0x18   :  { %p305_p10 = pnand %p303_p9, %p300_p8 }
  0x1a   :  { %308 = shalt.err (!%p305_p10)
}
  0x1b   :  { %s309_s16 = scalar_lea.vmem %s33_s8, 1024  ;;  %p314_p12 = scmp.lt.s32.totalorder %s33_s8, %s33_s8 }
  0x1c   :  { %p310_p11 = scmp.ne.s32.totalorder %s33_s8, %s309_s16  ;;  %p315_p13 = scmp.lt.s32.totalorder %s309_s16, %s309_s16 }
  0x1e   :  { %p316_p0 = por %p315_p13, %p314_p12 }
  0x20   :  { %p317_p1 = pnand %p316_p0, %p310_p11 }
  0x22   :  { %320 = shalt.err (!%p317_p1)
}
  0x23   :  { %38 = dma.hbm_to_vmem [thread:$0]  %s466_s1, 1024, %s33_s8, [#allocation6], %s374_s28, %s374_s28, %s375_s29  }
  0x24   :  { %365 = dma.done.wait [#allocation3], 128  }
  0x25   :  { %366 = vsyncadd [#allocation3], 4294967168 }
  0x26   :  { %367 = dma.done.wait [#allocation6], 1024  }
  0x27   :  { %368 = vsyncadd [#allocation6], 4294966272  ;;  %v377_v0 = vmov 0.0   ;;  %vm378_vm0 = vmmov 0   ;;  %v266_v1 = vld [vmem:[#allocation5] sm:$0xff]   ;;  %v267_v2 = vld [vmem:[#allocation5 + $0x8] sm:$0xff]  }
  0x28   :  { %238 = vmatprep.subr.bf16.mxu0 %v377_v0  ;;  %254 = vmatprep.mubr.msk.bf16.mxu0 %vm378_vm0, %v377_v0  ;;  %v268_v3 = vld [vmem:[#allocation5 + $0x10] sm:$0xff]   ;;  %v269_v4 = vld [vmem:[#allocation5 + $0x18] sm:$0xff]   ;;  %v270_v5 = vld [vmem:[#allocation5 + $0x20] sm:$0xff]   ;;  %s379_s19 = smov [#allocation7]   ;;  %s380_s21 = smov [#allocation8]  }
  0x29   :  { %239 = vmatpush3.bf16.msra.mxu0 %v266_v1  ;;  %v271_v6 = vld [vmem:[#allocation5 + $0x28] sm:$0xff]   ;;  %v272_v7 = vld [vmem:[#allocation5 + $0x30] sm:$0xff]   ;;  %v273_v8 = vld [vmem:[#allocation5 + $0x38] sm:$0xff]   ;;  %s193_s20 = sshll.u32 %s379_s19, 4  ;;  %s203_s22 = sshll.u32 %s380_s21, 4  ;;  %s194_s20 = int_to_ptr.vmem [resolvable:$true] %s193_s20  ;;  %s204_s22 = int_to_ptr.vmem [resolvable:$true] %s203_s22 }
  0x2a   :  { %240 = vmatprep.subr.bf16.mxu0 %v377_v0  ;;  %v274_v9 = vld [vmem:[#allocation2] sm:$0xff]   ;;  %p326_p3 = scmp.lt.s32.totalorder %s194_s20, %s194_s20 }
  0x2b   :  { %v219_v10 = vld [vmem:[%s467_s2] ss:$0 sm:$0xff]  ;;  %s321_s2 = scalar_lea.vmem %s194_s20, 128 }
  0x2c   :  { %p322_p2 = scmp.ne.s32.totalorder %s194_s20, %s321_s2  ;;  %p327_p4 = scmp.lt.s32.totalorder %s321_s2, %s321_s2 }
  0x2d   :  { %241 = vmatpush3.bf16.msra.mxu0 %v267_v2 }
  0x2e   :  { %242 = vmatprep.subr.bf16.mxu0 %v377_v0  ;;  %p328_p5 = por %p327_p4, %p326_p3 }
  0x30   :  { %p329_p6 = pnand %p328_p5, %p322_p2 }
  0x31   :  { %243 = vmatpush3.bf16.msra.mxu0 %v268_v3 }
  0x32   :  { %244 = vmatprep.subr.bf16.mxu0 %v377_v0 }
  0x35   :  { %245 = vmatpush3.bf16.msra.mxu0 %v269_v4 }
  0x36   :  { %246 = vmatprep.subr.bf16.mxu0 %v377_v0 }
  0x39   :  { %247 = vmatpush3.bf16.msra.mxu0 %v270_v5 }
  0x3a   :  { %248 = vmatprep.subr.bf16.mxu0 %v377_v0 }
  0x3d   :  { %249 = vmatpush3.bf16.msra.mxu0 %v271_v6 }
  0x3e   :  { %250 = vmatprep.subr.bf16.mxu0 %v377_v0 }
  0x41   :  { %251 = vmatpush3.bf16.msra.mxu0 %v272_v7 }
  0x42   :  { %252 = vmatprep.subr.bf16.mxu0 %v377_v0 }
  0x45   :  { %253 = vmatpush3.bf16.msra.mxu0 %v273_v8 }
  0x48   :  { %255 = vmatmul.mubr.bf16.vlgmr.msra.gmra.mrb[0].mxu0 %v274_v9 }
 0x11b   :  { %v161_v11 = vpop.f32.mrb[0].mxu0 }
 0x11c   :  { %v162_v12 = vadd.f32 %v219_v10, %v161_v11  ;;  %v256_v13 = vpop.f32.mrb[1].mxu0 }
 0x11d   :  { %v164_v14 = vpop.f32.mrb[2].mxu0 }
 0x11e   :  { %168 = vst [vmem:[#allocation7] sm:$0xff] %v162_v12  ;;  %v165_v15 = vadd.f32 %v219_v10, %v164_v14  ;;  %v257_v16 = vpop.f32.mrb[3].mxu0  ;;  %v173_v17 = vmul.f32 %v162_v12, %v162_v12 }
 0x120   :  { %169 = vst [vmem:[#allocation8] sm:$0xff] %v165_v15  ;;  %174 = vadd.xlane.f32.xlu0 %v173_v17  ;;  %v170_v18 = vmul.f32 %v165_v15, %v162_v12  ;;  %v176_v19 = vmul.f32 %v165_v15, %v165_v15 }
 0x122   :  { %171 = vadd.xlane.f32.xlu1 %v170_v18 }
 0x124   :  { %177 = vadd.xlane.f32.xlu0 %v176_v19 }
 0x125   :  { %332 = shalt.err (!%p329_p6)
}
 0x126   :  { %s333_s25 = scalar_lea.hbm %s469_s4, 128 }
 0x127   :  { %p334_p7 = scmp.ne.s32.totalorder %s469_s4, %s333_s25  ;;  %p337_p8 = scmp.lt.u32.totalorder %s333_s25, %s469_s4 }
 0x129   :  { %p339_p9 = pnand %p337_p8, %p334_p7 }
 0x12b   :  { %342 = shalt.err (!%p339_p9)
}
 0x12c   :  { %196 = dma.vmem_to_hbm [thread:$0]  %s194_s20, 128, %s469_s4, [#allocation4]  }
 0x12d   :  { %s343_s7 = scalar_lea.vmem %s204_s22, 128  ;;  %p348_p11 = scmp.lt.s32.totalorder %s204_s22, %s204_s22 }
 0x12e   :  { %p344_p10 = scmp.ne.s32.totalorder %s204_s22, %s343_s7  ;;  %p349_p12 = scmp.lt.s32.totalorder %s343_s7, %s343_s7 }
 0x130   :  { %p350_p13 = por %p349_p12, %p348_p11 }
 0x132   :  { %p351_p0 = pnand %p350_p13, %p344_p10 }
 0x134   :  { %354 = shalt.err (!%p351_p0)
}
 0x135   :  { %s355_s10 = scalar_lea.hbm %s470_s5, 128 }
 0x136   :  { %p356_p1 = scmp.ne.s32.totalorder %s470_s5, %s355_s10  ;;  %p359_p2 = scmp.lt.u32.totalorder %s355_s10, %s470_s5 }
 0x138   :  { %p361_p3 = pnand %p359_p2, %p356_p1 }
 0x13a   :  { %364 = shalt.err (!%p361_p3)
}
 0x13b   :  { %206 = dma.vmem_to_hbm [thread:$0]  %s204_s22, 128, %s470_s5, [#allocation9]   ;;  %vm183_vm1 = vcmask 7168  }
 0x1ad   :  { %v175_v20 = vpop.xlane.xlu0 %174 }
 0x1af   :  { %v172_v25 = vpop.xlane.xlu1 %171 }
 0x1b1   :  { %v178_v21 = vpop.xlane.xlu0 %177 }
 0x1b2   :  { %v179_v22 = vmul.f32 %v178_v21, %v175_v20 }
 0x1b4   :  { %v180_v23 = vadd.f32 1e-08, %v179_v22 }
 0x1b6   :  { %275 = vrsqrt.f32 %v180_v23 }
 0x1c0   :  { %v276_v24 = vpop.eup %275 }
 0x1c1   :  { %v182_v26 = vmul.f32 %v276_v24, %v172_v25 }
 0x1c3   :  { %184 = vst.msk [vmem:[%s468_s3] sm:$0xff] %vm183_vm1, %v182_v26 }
 0x1c4   :  { %369 = dma.done.wait [#allocation4], 128  }
 0x1c5   :  { %370 = vsyncadd [#allocation4], 4294967168 }
 0x1c6   :  { %371 = dma.done.wait [#allocation9], 128  }
 0x1c7   :  { %372 = vsyncadd [#allocation9], 4294967168 }
 0x1c8   :  { %215 = vsyncpa [#allocation3], 1 }
 0x1c9   :  { %216 = vsyncpa [#allocation6], 1 }
 0x1ca   :  { %217 = vsyncpa [#allocation4], 1 }
 0x1cb   :  { %218 = vsyncpa [#allocation9], 1 }

</bundles_post_ra>
